<compile_context>
chip_gen: v6e
topology: v6e:2x2x1
jax: 0.10.0
libtpu: 0.0.40
codegen_flags: <defaults>
</compile_context>

<pallas_src>
import jax
import jax.numpy as jnp
from jax.experimental import pallas as pl
from jax.experimental.pallas import tpu as pltpu


def _graph_conv_kernel(x_ref, w0_ref, w1_ref, a_ref, diag_ref, shift_ref, o_ref):
    # x_ref:    (R, Cin)    bf16, R = batch_tile * Jp flattened node rows
    # w0_ref:   (Cin, Cout) bf16, BN scale folded in (self / diagonal term)
    # w1_ref:   (Cin, Cout) bf16, BN scale folded in (off-diagonal term)
    # a_ref:    (R, R)      bf16, block-diagonal off-diagonal softmax weights
    # diag_ref: (R, 1)      f32,  diagonal softmax weights per node
    # shift_ref:(1, Cout)   f32,  bias*bn_scale + bn_shift
    x = x_ref[...]

    # Two bf16 MXU matmuls with f32 accumulation (no lane-crossing slice).
    h0 = jnp.dot(x, w0_ref[...], preferred_element_type=jnp.float32)
    h1 = jnp.dot(x, w1_ref[...], preferred_element_type=jnp.float32)

    # Off-diagonal aggregation: bf16 MXU matmul, f32 accumulation.
    agg = jnp.dot(a_ref[...], h1.astype(jnp.bfloat16),
                  preferred_element_type=jnp.float32)

    # f32 epilogue (v5e VPU has no bf16); cast only at the store.
    out = diag_ref[...] * h0 + agg + shift_ref[...]
    o_ref[...] = jnp.maximum(out, 0.0).astype(o_ref.dtype)


def _pick_batch_tile(B, Jp, target_rows=256, min_grid=2):
    """Pick bt | B with rows = bt*Jp <= target_rows (hard cap on the kron
    block-diagonal adjacency tile), preferring bt such that the grid length
    B // bt is at least `min_grid` so the "parallel" grid axis can shard
    across both v7x TensorCores (free on v5e/v6e)."""
    cands = [bt for bt in range(1, B + 1) if B % bt == 0]
    cap = max(target_rows, Jp)                       # never below one batch element
    fits = [bt for bt in cands if bt * Jp <= cap]
    if not fits:
        fits = [1]
    pref = [bt for bt in fits if B // bt >= min_grid] or fits
    return max(pref)


def graph_conv_forward(x, w0, w1, adj_logits, bias, bn_scale, bn_shift,
                       out_dtype=jnp.float32, target_rows=256):
    B, J, Cin = x.shape
    Cout = w0.shape[1]

    # ---- Batch-invariant adjacency preprocessing (hoisted out of kernel) ----
    a = jax.nn.softmax(adj_logits.astype(jnp.float32), axis=1)     # (J, J)
    eye = jnp.eye(J, dtype=jnp.float32)
    diag = jnp.sum(a * eye, axis=1, keepdims=True)                 # (J, 1)
    a_off = a * (1.0 - eye)                                        # (J, J)

    # ---- Fold BN scale into the weights; bias + BN shift into one add ------
    # Exact by linearity: (agg(x@W) + bias)*scale + shift
    #                   == agg(x@(W*scale)) + bias*scale + shift.
    bn_scale = bn_scale.reshape(1, Cout).astype(jnp.float32)
    bn_shift = bn_shift.reshape(1, Cout).astype(jnp.float32)
    bias = bias.reshape(1, Cout).astype(jnp.float32)
    w0s = (w0.astype(jnp.float32) * bn_scale).astype(jnp.bfloat16)  # (Cin, Cout)
    w1s = (w1.astype(jnp.float32) * bn_scale).astype(jnp.bfloat16)  # (Cin, Cout)
    shift = bn_shift + bias * bn_scale                               # (1, Cout) f32

    # ---- Pad J to a sublane multiple so partial batch blocks are legal -----
    Jp = ((J + 7) // 8) * 8
    if Jp != J:
        x = jnp.pad(x, ((0, 0), (0, Jp - J), (0, 0)))
        a_off = jnp.pad(a_off, ((0, Jp - J), (0, Jp - J)))
        diag = jnp.pad(diag, ((0, Jp - J), (0, 0)))

    # ---- Batch tiling: several batches per grid step, grid >= 2 when B >= 2 -
    bt = _pick_batch_tile(B, Jp, target_rows=target_rows)
    rows = bt * Jp
    grid = (B // bt,)

    a_tile = jnp.kron(jnp.eye(bt, dtype=jnp.float32),
                      a_off).astype(jnp.bfloat16)                  # (rows, rows)
    diag_tile = jnp.tile(diag, (bt, 1))                            # (rows, 1) f32

    x2d = x.reshape(B * Jp, Cin).astype(jnp.bfloat16)

    out2d = pl.pallas_call(
        _graph_conv_kernel,
        out_shape=jax.ShapeDtypeStruct((B * Jp, Cout), out_dtype),
        grid=grid,
        in_specs=[
            pl.BlockSpec((rows, Cin), lambda b: (b, 0)),       # x rows (bf16)
            pl.BlockSpec((Cin, Cout), lambda b: (0, 0)),       # W0*scale (bf16)
            pl.BlockSpec((Cin, Cout), lambda b: (0, 0)),       # W1*scale (bf16)
            pl.BlockSpec((rows, rows), lambda b: (0, 0)),      # block-diag A_off
            pl.BlockSpec((rows, 1), lambda b: (0, 0)),         # diag weights (f32)
            pl.BlockSpec((1, Cout), lambda b: (0, 0)),         # folded shift (f32)
        ],
        out_specs=pl.BlockSpec((rows, Cout), lambda b: (b, 0)),
        compiler_params=pltpu.CompilerParams(dimension_semantics=("parallel",)),
    )(x2d, w0s, w1s, a_tile, diag_tile, shift)

    out = out2d.reshape(B, Jp, Cout)
    if Jp != J:
        out = out[:, :J, :]
    return out


def _reference(x, w0, w1, adj_logits, bias, bn_scale, bn_shift):
    h0 = jnp.matmul(x, w0)
    h1 = jnp.matmul(x, w1)
    a = jax.nn.softmax(adj_logits, axis=1)
    J = adj_logits.shape[0]
    eye = jnp.eye(J, dtype=jnp.float32)
    out = jnp.matmul(a * eye, h0) + jnp.matmul(a * (1.0 - eye), h1) + bias
    out = out * bn_scale + bn_shift
    return jnp.maximum(out, 0.0)


if __name__ == "__main__":
    B, J, Cin, Cout = 2, 16, 32, 32

    key = jax.random.PRNGKey(0)
    k_x, k_w, k_b = jax.random.split(key, 3)

    # Input features per node.
    x = jax.random.normal(k_x, (B, J, Cin), dtype=jnp.float32)

    # SemGraphConv.W : shape (2, Cin, Cout), xavier_uniform(gain=1.414).
    fan_in, fan_out = Cin * Cout, 2 * Cout
    bound = 1.414 * (6.0 / (fan_in + fan_out)) ** 0.5
    W = jax.random.uniform(k_w, (2, Cin, Cout), jnp.float32, -bound, bound)
    w0, w1 = W[0], W[1]

    # SemGraphConv.bias : uniform(-stdv, stdv), stdv = 1/sqrt(Cout).
    stdv = 1.0 / (Cout ** 0.5)
    bias = jax.random.uniform(k_b, (1, Cout), jnp.float32, -stdv, stdv)

    # Deterministic adjacency: self-loops + chain neighbours (J x J).
    eye = jnp.eye(J, dtype=jnp.float32)
    chain = (jnp.diag(jnp.ones(J - 1, jnp.float32), 1)
             + jnp.diag(jnp.ones(J - 1, jnp.float32), -1))
    adj = eye + chain
    # e parameter initialized to 1 at every nonzero-adj position.
    adj_logits = jnp.where(adj > 0, 1.0, -9e15).astype(jnp.float32)

    # BatchNorm1d(output_dim) inference: gamma=1, beta=0, running stats 0/1.
    eps = 1e-5
    gamma = jnp.ones((1, Cout), jnp.float32)
    beta = jnp.zeros((1, Cout), jnp.float32)
    run_mean = jnp.zeros((1, Cout), jnp.float32)
    run_var = jnp.ones((1, Cout), jnp.float32)
    bn_scale = gamma / jnp.sqrt(run_var + eps)
    bn_shift = beta - run_mean * bn_scale

    out = graph_conv_forward(x, w0, w1, adj_logits, bias, bn_scale, bn_shift)
    out = jax.block_until_ready(out)

    ref = _reference(x, w0, w1, adj_logits, bias, bn_scale, bn_shift)
    assert out.shape == (B, J, Cout)
    # bf16 MXU operands -> relaxed tolerance vs. the pure-f32 reference.
    assert jnp.allclose(out, ref, atol=3e-2, rtol=3e-2), "mismatch vs reference"

    print("KERNEL_OK")
</pallas_src>

<mosaic_0001>
module attributes {stable_mosaic.version = 11 : i64} {
  func.func @_graph_conv_kernel(%arg0: i32, %arg1: memref<16x32xbf16, #tpu.memory_space<vmem>>, %arg2: memref<32x32xbf16, #tpu.memory_space<vmem>>, %arg3: memref<32x32xbf16, #tpu.memory_space<vmem>>, %arg4: memref<16x16xbf16, #tpu.memory_space<vmem>>, %arg5: memref<16x1xf32, #tpu.memory_space<vmem>>, %arg6: memref<1x32xf32, #tpu.memory_space<vmem>>, %arg7: memref<16x32xf32, #tpu.memory_space<vmem>>) attributes {dimension_semantics = [#tpu.dimension_semantics<parallel>], iteration_bounds = array<i64: 2>, scalar_prefetch = 0 : i64, scratch_operands = 0 : i64, tpu.core_type = #tpu.core_type<tc>, window_params = [{transform_indices = @transform_0, window_bounds = array<i64: 16, 32>}, {pipeline_mode = #tpu.pipeline_mode<synchronous>, transform_indices = @transform_1, window_bounds = array<i64: 32, 32>}, {pipeline_mode = #tpu.pipeline_mode<synchronous>, transform_indices = @transform_2, window_bounds = array<i64: 32, 32>}, {pipeline_mode = #tpu.pipeline_mode<synchronous>, transform_indices = @transform_3, window_bounds = array<i64: 16, 16>}, {pipeline_mode = #tpu.pipeline_mode<synchronous>, transform_indices = @transform_4, window_bounds = array<i64: 16, 1>}, {pipeline_mode = #tpu.pipeline_mode<synchronous>, transform_indices = @transform_5, window_bounds = array<i64: 1, 32>}, {transform_indices = @transform_6, window_bounds = array<i64: 16, 32>}]} {
    %c0 = arith.constant 0 : index
    %c0_0 = arith.constant 0 : index
    %0 = vector.load %arg1[%c0, %c0_0] : memref<16x32xbf16, #tpu.memory_space<vmem>>, vector<16x32xbf16>
    %c0_1 = arith.constant 0 : index
    %c0_2 = arith.constant 0 : index
    %1 = vector.load %arg2[%c0_1, %c0_2] : memref<32x32xbf16, #tpu.memory_space<vmem>>, vector<32x32xbf16>
    %cst = arith.constant dense<0.000000e+00> : vector<16x32xf32>
    %2 = tpu.matmul %0, %1, %cst {dimension_numbers = #tpu.dot_dimension_numbers<[1], [0], [0], [1], [0, 0, 1, 1], [], []>} : vector<16x32xbf16>, vector<32x32xbf16>, vector<16x32xf32> -> vector<16x32xf32>
    %c0_3 = arith.constant 0 : index
    %c0_4 = arith.constant 0 : index
    %3 = vector.load %arg3[%c0_3, %c0_4] : memref<32x32xbf16, #tpu.memory_space<vmem>>, vector<32x32xbf16>
    %cst_5 = arith.constant dense<0.000000e+00> : vector<16x32xf32>
    %4 = tpu.matmul %0, %3, %cst_5 {dimension_numbers = #tpu.dot_dimension_numbers<[1], [0], [0], [1], [0, 0, 1, 1], [], []>} : vector<16x32xbf16>, vector<32x32xbf16>, vector<16x32xf32> -> vector<16x32xf32>
    %c0_6 = arith.constant 0 : index
    %c0_7 = arith.constant 0 : index
    %5 = vector.load %arg4[%c0_6, %c0_7] : memref<16x16xbf16, #tpu.memory_space<vmem>>, vector<16x16xbf16>
    %6 = arith.truncf %4 : vector<16x32xf32> to vector<16x32xbf16>
    %cst_8 = arith.constant dense<0.000000e+00> : vector<16x32xf32>
    %7 = tpu.matmul %5, %6, %cst_8 {dimension_numbers = #tpu.dot_dimension_numbers<[1], [0], [0], [1], [0, 0, 1, 1], [], []>} : vector<16x16xbf16>, vector<16x32xbf16>, vector<16x32xf32> -> vector<16x32xf32>
    %c0_9 = arith.constant 0 : index
    %c0_10 = arith.constant 0 : index
    %8 = vector.load %arg5[%c0_9, %c0_10] : memref<16x1xf32, #tpu.memory_space<vmem>>, vector<16x1xf32>
    %9 = vector.broadcast %8 : vector<16x1xf32> to vector<16x32xf32>
    %10 = arith.mulf %9, %2 : vector<16x32xf32>
    %11 = arith.addf %10, %7 : vector<16x32xf32>
    %c0_11 = arith.constant 0 : index
    %c0_12 = arith.constant 0 : index
    %12 = vector.load %arg6[%c0_11, %c0_12] : memref<1x32xf32, #tpu.memory_space<vmem>>, vector<1x32xf32>
    %13 = vector.broadcast %12 : vector<1x32xf32> to vector<16x32xf32>
    %14 = arith.addf %11, %13 : vector<16x32xf32>
    %cst_13 = arith.constant 0.000000e+00 : f32
    %15 = vector.broadcast %cst_13 : f32 to vector<16x32xf32>
    %16 = arith.maximumf %14, %15 : vector<16x32xf32>
    %c0_14 = arith.constant 0 : index
    %c0_15 = arith.constant 0 : index
    %17 = vector.load %arg7[%c0_14, %c0_15] : memref<16x32xf32, #tpu.memory_space<vmem>>, vector<16x32xf32>
    tpu.vector_store %arg7[%c0_14, %c0_15], %16 {strides = array<i32>} : memref<16x32xf32, #tpu.memory_space<vmem>>, vector<16x32xf32>,
    return
  }
  func.func @transform_0(%arg0: i32) -> (i32, i32) {
    %c0_i32 = arith.constant 0 : i32
    %c0_i32_0 = arith.constant 0 : i32
    return %arg0, %c0_i32 : i32, i32
  }
  func.func @transform_1(%arg0: i32) -> (i32, i32) {
    %c0_i32 = arith.constant 0 : i32
    %c0_i32_0 = arith.constant 0 : i32
    %c0_i32_1 = arith.constant 0 : i32
    return %c0_i32, %c0_i32_0 : i32, i32
  }
  func.func @transform_2(%arg0: i32) -> (i32, i32) {
    %c0_i32 = arith.constant 0 : i32
    %c0_i32_0 = arith.constant 0 : i32
    %c0_i32_1 = arith.constant 0 : i32
    return %c0_i32, %c0_i32_0 : i32, i32
  }
  func.func @transform_3(%arg0: i32) -> (i32, i32) {
    %c0_i32 = arith.constant 0 : i32
    %c0_i32_0 = arith.constant 0 : i32
    %c0_i32_1 = arith.constant 0 : i32
    return %c0_i32, %c0_i32_0 : i32, i32
  }
  func.func @transform_4(%arg0: i32) -> (i32, i32) {
    %c0_i32 = arith.constant 0 : i32
    %c0_i32_0 = arith.constant 0 : i32
    %c0_i32_1 = arith.constant 0 : i32
    return %c0_i32, %c0_i32_0 : i32, i32
  }
  func.func @transform_5(%arg0: i32) -> (i32, i32) {
    %c0_i32 = arith.constant 0 : i32
    %c0_i32_0 = arith.constant 0 : i32
    %c0_i32_1 = arith.constant 0 : i32
    return %c0_i32, %c0_i32_0 : i32, i32
  }
  func.func @transform_6(%arg0: i32) -> (i32, i32) {
    %c0_i32 = arith.constant 0 : i32
    %c0_i32_0 = arith.constant 0 : i32
    return %arg0, %c0_i32 : i32, i32
  }
}

</mosaic_0001>

<bundles_post_ra>
// kernel: tpu_custom_call.1
= control target key start
LH: loop header
LB: loop body
LE: loop exit
PB: predicated region body
PF: predicated region fallthrough
CT: control target
= control target key end

     0   :  { %11 = vsyncpa [#allocation3], 0  ;;  %s1115_s0 = inlined_call_operand.vmem [shape: bf16[32,32], index: 0, kind: input, shape index: {}]   ;;  %s1116_s1 = inlined_call_operand.hbm [shape: bf16[32,32], index: 1, kind: input, shape index: {}]   ;;  %s1117_s2 = inlined_call_operand.hbm [shape: bf16[32,32], index: 2, kind: input, shape index: {}]   ;;  %s1118_s3 = inlined_call_operand.hbm [shape: bf16[16,16], index: 3, kind: input, shape index: {}]   ;;  %s1119_s4 = inlined_call_operand.vmem [shape: f32[16,1], index: 4, kind: input, shape index: {}]   ;;  %s1120_s5 = inlined_call_operand.vmem [shape: f32[1,32], index: 5, kind: input, shape index: {}]   ;;  %s1121_s6 = inlined_call_operand.hbm [shape: f32[32,32], index: 6, kind: output, shape index: {}]  }
   0x1   :  { %12 = vsyncpa [#allocation6], 0 }
   0x2   :  { %13 = vsyncpa [#allocation4], 0 }
   0x3   :  { %15 = vsyncpa [#allocation4 + $0x1], 0  ;;  %s949_s21 = smov 0   ;;  %s951_s22 = smov 0  }
   0x4   :  { %s953_s23 = smov 0   ;;  %s955_s24 = smov 0  }
   0x5 LB: > { %s970_s25 = sadd.s32 4294967295, %s901_s24   ;;  %s612_s26 = sadd.s32 4294967294, %s901_s24   ;;  %s901_s24 = sphi %s955_s24, %s1137_s24   ;;  %s897_s23 = sphi %s953_s23, %s1136_s23   ;;  %s893_s22 = sphi %s951_s22, %s1135_s22   ;;  %s889_s21 = sphi %s949_s21, %s1134_s21  }
   0x6   : > { %s974_s27 = sadd.s32 1, %s901_s24   ;;  %s159_s28 = sadd.s32 1, %s897_s23 }
   0x7   : > { %s156_s29 = ssub.s32 %s901_s24, %s974_s27  ;;  %p169_p0 = scmp.ne.s32.totalorder %s897_s23, %s893_s22 }
   0x8   : > { %p157_p1 = scmp.eq.s32.totalorder %s156_s29, 0  ;;  %p170_p2 = scmp.eq.s32.totalorder %s970_s25, 1 }
   0x9   : > { %p175_p3 = scmp.ne.s32.totalorder %s893_s22, %s889_s21  ;;  %p176_p4 = scmp.eq.s32.totalorder %s612_s26, 1 }
   0xa   : > { %s985_s30 = scalar_select %p157_p1, %s897_s23, %s159_s28  }
   0xb   : > { %p987_p5 = por %p170_p2, %p169_p0  ;;  %p991_p6 = por %p176_p4, %p175_p3 }
   0xc   : > { %p613_p7 = scmp.ge.s32.totalorder %s901_s24, 1  ;;  %p183_p8 = scmp.lt.s32.totalorder %s901_s24, 3 }
   0xd   : > { %s1124_s7 = scalar_select %p987_p5, 1, 0 }
   0xe   : > { %s1125_s8 = scalar_select %p991_p6, 1, 0 }
   0xf   : > { %p1122_p9 = scmp.eq.s32.totalorder %s970_s25, 0  ;;  %p998_p10 = pnand %p613_p7, %p183_p8 }
  0x10   : > { %s903_s10 = smov [#allocation5]   ;;  %s904_s13 = smov [#allocation2]  }
  0x11   : > { %p685_p11 = pneg %p998_p10  ;;  %s208_s11 = sshll.u32 %s903_s10, 4  ;;  %s209_s11 = int_to_ptr.vmem [resolvable:$true] %s208_s11 }
  0x12   : > { %s195_s14 = sshll.u32 %s904_s13, 4  ;;  %s905_s15 = smov [#allocation7]   ;;  %s196_s14 = int_to_ptr.vmem [resolvable:$true] %s195_s14 }
  0x13   : > { %p1006_p12 = pnand %p1122_p9, %p685_p11  ;;  %s221_s16 = sshll.u32 %s905_s15, 4  ;;  %s222_s16 = int_to_ptr.vmem [resolvable:$true] %s221_s16 }
  0x14   : > { %s766_s17 = scalar_lea.vmem %s209_s11, 256  ;;  %p774_p3 = scmp.lt.s32.totalorder %s209_s11, %s209_s11 }
  0x15   : > { %p757_p13 = pneg %p1006_p12  ;;  %p767_p0 = scmp.ne.s32.totalorder %s209_s11, %s766_s17 }
  0x16   : > { %p775_p4 = scmp.lt.s32.totalorder %s766_s17, %s766_s17 }
  0x17   : > { %p769_p1 = pnand %p767_p0, %p757_p13 }
  0x18   : > { %p776_p7 = por %p775_p4, %p774_p3 }
  0x19   : > { %p770_p2 = pneg %p769_p1 }
  0x1b   : > { %p777_p8 = pnand %p776_p7, %p770_p2 }
  0x1d   : > { %780 = shalt.err (!%p777_p8)
}
  0x1e   : > { %s906_s18 = smov 64   ;;  %s907_s19 = smov 4  }
  0x1f   : > { %691 = dma.hbm_to_vmem [thread:$0]  (!%p1006_p12), %s1117_s2, 256, %s209_s11, [#allocation6], %s906_s18, %s906_s18, %s907_s19  }
  0x20   : > { %s792_s28 = scalar_lea.vmem %s196_s14, 256  ;;  %p800_p9 = scmp.lt.s32.totalorder %s196_s14, %s196_s14 }
  0x21   : > { %p793_p11 = scmp.ne.s32.totalorder %s196_s14, %s792_s28  ;;  %p801_p6 = scmp.lt.s32.totalorder %s792_s28, %s792_s28 }
  0x23   : > { %p795_p0 = pnand %p793_p11, %p757_p13  ;;  %p802_p3 = por %p801_p6, %p800_p9 }
  0x25   : > { %p796_p1 = pneg %p795_p0 }
  0x27   : > { %p803_p2 = pnand %p802_p3, %p796_p1 }
  0x29   : > { %806 = shalt.err (!%p803_p2)
}
  0x2a   : > { %688 = dma.hbm_to_vmem [thread:$0]  (!%p1006_p12), %s1116_s1, 256, %s196_s14, [#allocation3], %s906_s18, %s906_s18, %s907_s19  }
  0x2b   : > { %s818_s11 = scalar_lea.vmem %s222_s16, 128  ;;  %p826_p11 = scmp.lt.s32.totalorder %s222_s16, %s222_s16 }
  0x2c   : > { %p819_p4 = scmp.ne.s32.totalorder %s222_s16, %s818_s11  ;;  %p827_p0 = scmp.lt.s32.totalorder %s818_s11, %s818_s11 }
  0x2e   : > { %p821_p7 = pnand %p819_p4, %p757_p13  ;;  %p828_p5 = por %p827_p0, %p826_p11 }
  0x30   : > { %p822_p8 = pneg %p821_p7 }
  0x32   : > { %p829_p6 = pnand %p828_p5, %p822_p8 }
  0x34   : > { %832 = shalt.err (!%p829_p6)
}
  0x35   : > { %694 = dma.hbm_to_vmem [thread:$0]  (!%p1006_p12), %s1118_s3, 128, %s222_s16, [#allocation6], %s906_s18, %s906_s18, %s907_s19  }
  0x36   : > { %252 = sbr.rel (%p998_p10) target bundleno = 492 (0x1ec), region = 44  ;;  %p1128_p9 = scmp.eq.s32.totalorder (!%p998_p10), %s970_s25, 0 }
  0x3b   : > { %876 = dma.done.wait (%p1128_p9), [#allocation3], 256   ;;  %p1129_p13 = pmov %p1128_p9 }
  0x3c   : > { %p1130_p1 = pmov %p1128_p9 }
  0x3d   : > { %878 = vsyncadd (%p1129_p13), [#allocation3], 4294967040 }
  0x3e   : > { %880 = dma.done.wait (%p1130_p1), [#allocation6], 384   ;;  %p1131_p5 = pmov %p1130_p1 }
  0x3f   : > { %s623_s12 = sshll.u32 %s970_s25, 1  ;;  %v908_v0 = vmov 0.0   ;;  %vm909_vm0 = vmmov 0   ;;  %v749_v1 = vld [vmem:[#allocation5 + $0x8] sm:$0xff]   ;;  %v750_v2 = vld [vmem:[#allocation5] sm:$0xff]   ;;  %v752_v3 = vld [vmem:[#allocation2 + $0x8] sm:$0xff]  }
  0x40   : > { %882 = vsyncadd (%p1131_p5), [#allocation6], 4294966912  ;;  %657 = vmatprep.subr.bf16.mxu1 %v908_v0  ;;  %661 = vmatprep.mubr.msk.bf16.mxu1 %vm909_vm0, %v908_v0  ;;  %p291_p10 = scmp.lt.s32.totalorder %s623_s12, 3  ;;  %v753_v5 = vld [vmem:[#allocation2] sm:$0xff]   ;;  %vm321_vm1 = vcmask 261120   ;;  %v910_v7 = vmov 0  }
  0x41   : > { %649 = vmatprep.subr.bf16.mxu0 %v908_v0  ;;  %653 = vmatprep.mubr.msk.bf16.mxu0 %vm909_vm0, %v908_v0  ;;  %v476_v6 = vld [vmem:[%s1119_s4] sm:$0xff]  ;;  %v477_v8 = vld [vmem:[%s1119_s4 + $0x8] sm:$0xff]  ;;  %vm431_vm2 = vcmask 130048   ;;  %s287_s28 = sand.u32 1, %s893_s22   ;;  %s640_s13 = sshll.u32 %s970_s25, 8 }
  0x42   : > { %s1139_s12 = smov (!%p291_p10, %s623_s12), 3  ;;  %658 = vmatpush3.bf16.msra.mxu1 %v749_v1  ;;  %650 = vmatpush3.bf16.msra.mxu0 %v752_v3  ;;  %v754_v16 = vld [vmem:[#allocation7] sm:$0xff]   ;;  %s622_s11 = sshll.u32 %s287_s28, 4 }
  0x43   : > { %s624_s9 = sshll.u32 %s1139_s12, 2  ;;  %659 = vmatprep.subr.bf16.mxu1 %v908_v0  ;;  %651 = vmatprep.subr.bf16.mxu0 %v908_v0  ;;  %v634_v23 = vld [vmem:[%s1120_s5] ss:$0 sm:$0xff]  ;;  %s289_s15 = scalar_lea.vmem [#allocation8], %s622_s11 }
  0x44   : > { %s294_s17 = scalar_lea.vmem %s1115_s0, %s624_s9  ;;  %748 = vset.pattern.permute.xlu0 %v910_v7  ;;  %s519_s12 = sshll.u32 %s289_s15, 4  ;;  %s1072_s12 = int_to_ptr.vmem [resolvable:$true] %s519_s12 }
  0x45   : > { %v751_v4 = vld [vmem:[%s294_s17] sm:$0xff]   ;;  %480 = vperm.xlu0 %748, %v476_v6   ;;  %s1070_s16 = scalar_lea.hbm %s1121_s6, %s640_s13  ;;  %s1075_s25 = scalar_lea.sflag [#allocation4], %s287_s28 }
  0x46   : > { %660 = vmatpush3.bf16.msra.mxu1 %v750_v2  ;;  %652 = vmatpush3.bf16.msra.mxu0 %v753_v5  ;;  %s833_s17 = scalar_lea.vmem %s1072_s12, 256  ;;  %p1132_p3 = scmp.ne.s32.totalorder %s1124_s7, 0 }
  0x47   : > { %665 = vmatprep.subr.bf16.mxu0 %v908_v0  ;;  %p834_p12 = scmp.ne.s32.totalorder %s1072_s12, %s833_s17  ;;  %s911_s18 = smov [#allocation8]  }
  0x48   : > { %s837_s19 = sshll.u32 %s911_s18, 4  ;;  %s838_s19 = int_to_ptr.vmem [resolvable:$false] %s837_s19 }
  0x49   : > { %662 = vmatmul.mubr.msk.bf16.vlgmr.msra.gmra.mxu1 %vm321_vm1, %v751_v4  ;;  %654 = vmatmul.mubr.msk.bf16.vlgmr.msra.gmra.mxu0 %vm321_vm1, %v751_v4  ;;  %p835_p2 = pnand %p834_p12, %p1132_p3  ;;  %s839_s20 = scalar_lea.vmem %s838_s19, 512 }
  0x4a   : > { %667 = vmatprep.mubr.msk.bf16.mxu0 %vm909_vm0, %v908_v0  ;;  %485 = vperm.xlu0 %748, %v477_v8   ;;  %p840_p7 = scmp.lt.s32.totalorder %s1072_s12, %s838_s19  ;;  %p841_p8 = scmp.lt.s32.totalorder %s839_s20, %s833_s17 }
  0x4b   : > { %p836_p4 = pneg %p835_p2 }
  0x4c   : > { %p842_p11 = por %p841_p8, %p840_p7 }
  0x4e   : > { %p843_p0 = pnand %p842_p11, %p836_p4 }
  0xc0   : > { %v481_v19 = vpop.permute.xlu0 %480 }
  0xc5   : > { %v486_v21 = vpop.permute.xlu0 %485 }
 0x109   : > { %v416_v9 = vpop.f32.mrf.mxu1  ;;  %v359_v11 = vpop.f32.mrf.mxu0 }
 0x10a   : > { %v488_v20 = vmul.f32 %v481_v19, %v359_v11 }
 0x10b   : > { %v663_v10 = vpop.f32.mrf.mxu1  ;;  %v655_v14 = vpop.f32.mrf.mxu0 }
 0x10d   : > { %v419_v12 = vpop.f32.mrf.mxu1  ;;  %v362_v17 = vpop.f32.mrf.mxu0 }
 0x10e   : > { %v425_v13 = vpack.c.bf16 %v419_v12, %v416_v9  ;;  %v489_v26 = vmul.f32 %v486_v21, %v362_v17 }
 0x10f   : > { %v664_v15 = vpop.f32.mrf.mxu1  ;;  %v656_v18 = vpop.f32.mrf.mxu0 }
 0x110   : > { %666 = vmatpush3.bf16.msra.mxu0 %v425_v13 }
 0x113   : > { %668 = vmatmul.mubr.msk.bf16.vlgmr.msra.gmra.mxu0 %vm431_vm2, %v754_v16 }
 0x1d3   : > { %v469_v22 = vpop.f32.mrf.mxu0 }
 0x1d4   : > { %v490_v24 = vadd.f32 %v488_v20, %v469_v22 }
 0x1d5   : > { %v669_v25 = vpop.f32.mrf.mxu0 }
 0x1d6   : > { %v499_v27 = vadd.f32 %v634_v23, %v490_v24 }
 0x1d7   : > { %v472_v28 = vpop.f32.mrf.mxu0 }
 0x1d8   : > { %v501_v29 = vmax.f32 %v499_v27, 0.0  ;;  %v491_v30 = vadd.f32 %v489_v26, %v472_v28 }
 0x1d9   : > { %v670_v31 = vpop.f32.mrf.mxu0 }
 0x1da   : > { %503 = vst.msk [vmem:[%s289_s15] sm:$0xff] %vm321_vm1, %v501_v29  ;;  %v500_v32 = vadd.f32 %v634_v23, %v491_v30 }
 0x1dc   : > { %v502_v33 = vmax.f32 %v500_v32, 0.0 }
 0x1de   : > { %504 = vst.msk [vmem:[%s289_s15 + $0x8] sm:$0xff] %vm321_vm1, %v502_v33 }
 0x1df   : > { %846 = shalt.err (!%p843_p0)
}
 0x1e0   : > { %s847_s26 = scalar_lea.hbm %s1070_s16, 256  ;;  %s851_s10 = scalar_lea.hbm %s1121_s6, 512 }
 0x1e1   : > { %p848_p6 = scmp.ne.s32.totalorder %s1070_s16, %s847_s26  ;;  %p852_p1 = scmp.lt.s32.totalorder %s1070_s16, %s1121_s6 }
 0x1e2   : > { %p853_p5 = scmp.lt.s32.totalorder %s851_s10, %s847_s26 }
 0x1e3   : > { %p849_p9 = pnand %p848_p6, %p1132_p3 }
 0x1e4   : > { %p854_p10 = por %p853_p5, %p852_p1 }
 0x1e5   : > { %p850_p13 = pneg %p849_p9 }
 0x1e7   : > { %p855_p12 = pnand %p854_p10, %p850_p13 }
 0x1e9   : > { %858 = shalt.err (!%p855_p12)
}
 0x1ea   : > { %s912_s15 = smov 128   ;;  %s913_s9 = smov 8  }
 0x1eb   : > { %683 = dma.vmem_to_hbm [thread:$0]  (%p1132_p3), %s1072_s12, 256, %s1070_s16, %s1075_s25, %s912_s15, %s912_s15, %s913_s9  }
 0x1ec PF: > { %p705_p2 = scmp.ge.s32.totalorder %s901_s24, 2  ;;  %s534_s14 = sand.u32 1, %s889_s21  }
 0x1ed   : > { %p1133_p4 = scmp.ne.s32.totalorder %s1125_s8, 0  ;;  %s535_s17 = scalar_lea.sflag [#allocation4], %s534_s14 }
 0x1ef   : > { %p696_p7 = pnand %p705_p2, %p1133_p4 }
 0x1f1   : > { %p697_p8 = pneg %p696_p7 }
 0x1f3   : > { %884 = dma.done.wait (%p697_p8), %s535_s17, 256  }
 0x1f4   : > { %886 = vsyncadd (%p697_p8), %s535_s17, 4294967040  ;;  %p18_p11 = scmp.ge.s32.totalorder %s974_s27, 4   ;;  %s1134_s21 = smov %s893_s22 }
 0x1f5   : > { %s1135_s22 = smov %s897_s23  ;;  %s1136_s23 = smov %s985_s30 }
 0x1f6   : > { %s1137_s24 = smov %s974_s27  ;;  %20 = sbr.rel (!%p18_p11) target bundleno = 5 (0x5), region = 92 }
 0x1fb   :  { %540 = vsyncpa [#allocation3], 1 }
 0x1fc   :  { %542 = vsyncpa [#allocation3 + $0x1], 1 }
 0x1fd   :  { %543 = vsyncpa [#allocation6], 1 }
 0x1fe   :  { %544 = vsyncpa [#allocation4], 1 }
 0x1ff   :  { %546 = vsyncpa [#allocation4 + $0x1], 1 }

</bundles_post_ra>
